<compile_context>
chip_gen: v6e
topology: v6e:2x2x1
jax: 0.10.0
libtpu: 0.0.40
codegen_flags: <defaults>
</compile_context>

<pallas_src>
import functools
import math

import jax
import jax.numpy as jnp
import numpy as np
from jax import lax
from jax.experimental import pallas as pl
from jax.experimental.pallas import tpu as pltpu


def _round_up(x, m):
    return (x + m - 1) // m * m


# ---------------------------------------------------------------------------
# Stage 1: projection + per-head attention score vectors.
# ---------------------------------------------------------------------------
def _proj_kernel(feat_ref, w_ref, a_dst_ref, a_srcT_ref, z_ref, er_ref, elT_ref):
    # (Tn, Din) @ (Din, F) -> (Tn, F): single lane-dense projection per tile.
    z = jnp.dot(feat_ref[...], w_ref[...], preferred_element_type=jnp.float32)
    z_ref[...] = z.astype(z_ref.dtype)
    # er[n, h] = <z_h[n], a_dst_h> via a block-diagonal (F, H) matrix.
    er_ref[...] = jnp.dot(z, a_dst_ref[...], preferred_element_type=jnp.float32)
    # elT[h, n] = <z_h[n], a_src_h>, stored transposed so the attention kernel
    # can use it directly as a (1, Tk) row per head (no in-kernel transpose).
    elT_ref[...] = lax.dot_general(
        a_srcT_ref[...], z, (((1,), (1,)), ((), ())),
        preferred_element_type=jnp.float32)


# ---------------------------------------------------------------------------
# Stage 2: tiled masked (online) softmax + neighbor aggregation.
# ---------------------------------------------------------------------------
def _attn_kernel(adj_ref, z_ref, er_ref, elT_ref, bias_ref, out_ref,
                 m_sc, l_sc, acc_sc, *, num_heads, head_dim, feat_width,
                 negative_slope):
    H, D, F = num_heads, head_dim, feat_width
    k = pl.program_id(1)

    @pl.when(k == 0)
    def _init():
        m_sc[...] = jnp.full(m_sc.shape, -1e30, dtype=jnp.float32)
        l_sc[...] = jnp.zeros(l_sc.shape, dtype=jnp.float32)
        acc_sc[...] = jnp.zeros(acc_sc.shape, dtype=jnp.float32)

    has_edge = adj_ref[...] > 0          # (Tm, Tk) from int8 adjacency
    z_src = z_ref[...]                   # (Tk, F)  projected source features
    er = er_ref[...]                     # (Tm, H)  destination scores
    elT = elT_ref[...]                   # (H, Tk)  source scores (transposed)
    m_prev = m_sc[...]                   # (Tm, H)
    l_prev = l_sc[...]                   # (Tm, H)

    Tm = er.shape[0]
    neg_big = jnp.float32(-1e30)         # keep masked-softmax path in f32
    slope = jnp.float32(negative_slope)

    m_cols, l_cols, corr_cols, pv_cols = [], [], [], []
    for h in range(H):                   # H is small & static -> fully unrolled
        s = er[:, h:h + 1] + elT[h:h + 1, :]               # (Tm, Tk) raw scores
        s = jnp.where(s >= 0, s, slope * s)                # LeakyReLU
        s = jnp.where(has_edge, s, neg_big)                # mask non-edges
        m_h_prev = m_prev[:, h:h + 1]
        m_h = jnp.maximum(m_h_prev, jnp.max(s, axis=-1, keepdims=True))
        corr = jnp.exp(m_h_prev - m_h)                     # (Tm, 1) rescale
        p = jnp.where(has_edge, jnp.exp(s - m_h), 0.0)     # (Tm, Tk)
        l_h = corr * l_prev[:, h:h + 1] + jnp.sum(p, axis=-1, keepdims=True)
        # Weighted aggregation of this head's neighbor features (MXU).
        pv = jnp.dot(p, z_src[:, h * D:(h + 1) * D],
                     preferred_element_type=jnp.float32)   # (Tm, D)
        m_cols.append(m_h)
        l_cols.append(l_h)
        corr_cols.append(jnp.broadcast_to(corr, (Tm, D)))
        pv_cols.append(pv)

    m_sc[...] = jnp.concatenate(m_cols, axis=-1)
    l_sc[...] = jnp.concatenate(l_cols, axis=-1)

    pad = F - H * D
    if pad:  # keep the accumulator update full-width (lane-dense store)
        corr_cols.append(jnp.ones((Tm, pad), dtype=jnp.float32))
        pv_cols.append(jnp.zeros((Tm, pad), dtype=jnp.float32))
    acc_sc[...] = (jnp.concatenate(corr_cols, axis=-1) * acc_sc[...]
                   + jnp.concatenate(pv_cols, axis=-1))

    @pl.when(k == pl.num_programs(1) - 1)
    def _finalize():
        # Normalization happens once per dst tile (not per edge), so an exact
        # reciprocal is essentially free; flip approx=True (EUP) if ~1e-3
        # relative error in attention weights is acceptable.
        l = jnp.maximum(l_sc[...], jnp.float32(1e-30))     # guard isolated nodes
        inv = pl.reciprocal(l, approx=False)               # (Tm, H)
        inv_cols = [jnp.broadcast_to(inv[:, h:h + 1], (Tm, D)) for h in range(H)]
        if pad:
            inv_cols.append(jnp.ones((Tm, pad), dtype=jnp.float32))
        out = acc_sc[...] * jnp.concatenate(inv_cols, axis=-1) + bias_ref[...]
        out_ref[...] = out.astype(out_ref.dtype)


# ---------------------------------------------------------------------------
# Wrapper
# ---------------------------------------------------------------------------
def cugraph_gat_conv(feat, fc_weight, attn_weights, bias, adj, *, num_heads,
                     out_feats, negative_slope=0.2, block_nodes=128):
    """feat: (N, D_in) f32; adj[dst, src] dense 0/1; returns (N, H, D_out)."""
    N, in_feats = feat.shape
    H, D = num_heads, out_feats
    HD = H * D
    F = _round_up(HD, 128)            # lane-dense padded head*feature width
    T = block_nodes                   # 128-multiple node tile (v5e..v7x friendly)
    Np = _round_up(N, T)
    n_tiles = Np // T
    f32 = jnp.float32

    # ---- parameter / input packing (cheap host-side prep) ----
    w_pad = jnp.zeros((in_feats, F), f32).at[:, :HD].set(
        jnp.asarray(fc_weight, f32).T)                         # (Din, F)
    a = jnp.asarray(attn_weights, f32).reshape(2, HD)          # 0: src, 1: dst
    cols = jnp.arange(HD)
    heads = cols // D
    a_dst_mat = jnp.zeros((F, H), f32).at[cols, heads].set(a[1])    # (F, H)
    a_srcT_mat = jnp.zeros((H, F), f32).at[heads, cols].set(a[0])   # (H, F)
    bias_pad = jnp.zeros((1, F), f32).at[0, :HD].set(jnp.asarray(bias, f32))
    feat_pad = jnp.zeros((Np, in_feats), f32).at[:N].set(jnp.asarray(feat, f32))
    adj_i8 = jnp.zeros((Np, Np), jnp.int8).at[:N, :N].set(
        (jnp.asarray(adj) > 0).astype(jnp.int8))               # 4x less traffic

    # ---- stage 1: z = feat @ W_all, er (N,H), el^T (H,N) ----
    proj_cost = pl.CostEstimate(
        flops=int(2 * Np * in_feats * F + 4 * Np * F * H),
        transcendentals=0,
        bytes_accessed=int(4 * (Np * in_feats + in_feats * F + Np * F + 2 * Np * H)))
    z, er, elT = pl.pallas_call(
        _proj_kernel,
        out_shape=(jax.ShapeDtypeStruct((Np, F), f32),
                   jax.ShapeDtypeStruct((Np, H), f32),
                   jax.ShapeDtypeStruct((H, Np), f32)),
        grid_spec=pltpu.PrefetchScalarGridSpec(
            num_scalar_prefetch=0,
            grid=(n_tiles,),
            in_specs=[
                pl.BlockSpec((T, in_feats), lambda i: (i, 0)),   # feat tile
                pl.BlockSpec((in_feats, F), lambda i: (0, 0)),   # W_all (invariant)
                pl.BlockSpec((F, H), lambda i: (0, 0)),          # a_dst blockdiag
                pl.BlockSpec((H, F), lambda i: (0, 0)),          # a_src blockdiag^T
            ],
            out_specs=[
                pl.BlockSpec((T, F), lambda i: (i, 0)),          # z
                pl.BlockSpec((T, H), lambda i: (i, 0)),          # er
                pl.BlockSpec((H, T), lambda i: (0, i)),          # el^T
            ],
        ),
        compiler_params=pltpu.CompilerParams(dimension_semantics=("parallel",)),
        cost_estimate=proj_cost,
    )(feat_pad, w_pad, a_dst_mat, a_srcT_mat)

    # ---- stage 2: tiled masked softmax + aggregation ----
    # Note: grid-invariant blocks (bias, and z/er within a dst row of the grid)
    # are not re-DMA'd between consecutive steps since their block index does
    # not change; per-step VMEM is ~0.5 MiB at T=128 (safe for v7x's 64 MiB).
    attn_cost = pl.CostEstimate(
        flops=int(2 * Np * Np * H * D + 8 * Np * Np * H),
        transcendentals=int(Np * Np * H),
        bytes_accessed=int(Np * Np + 4 * (2 * Np * F + 2 * Np * H)))
    kernel = functools.partial(_attn_kernel, num_heads=H, head_dim=D,
                               feat_width=F, negative_slope=negative_slope)
    out_pad = pl.pallas_call(
        kernel,
        out_shape=jax.ShapeDtypeStruct((Np, F), f32),
        grid_spec=pltpu.PrefetchScalarGridSpec(
            num_scalar_prefetch=0,
            grid=(n_tiles, n_tiles),             # (dst tiles, src tiles)
            in_specs=[
                pl.BlockSpec((T, T), lambda i, k: (i, k)),   # adjacency (int8)
                pl.BlockSpec((T, F), lambda i, k: (k, 0)),   # z rows of src tile
                pl.BlockSpec((T, H), lambda i, k: (i, 0)),   # er rows of dst tile
                pl.BlockSpec((H, T), lambda i, k: (0, k)),   # el^T cols of src tile
                pl.BlockSpec((1, F), lambda i, k: (0, 0)),   # bias (invariant)
            ],
            out_specs=pl.BlockSpec((T, F), lambda i, k: (i, 0)),
            scratch_shapes=[
                pltpu.VMEM((T, H), jnp.float32),   # running max  m
                pltpu.VMEM((T, H), jnp.float32),   # running sum  l
                pltpu.VMEM((T, F), jnp.float32),   # output accumulator
            ],
        ),
        compiler_params=pltpu.CompilerParams(
            dimension_semantics=("parallel", "arbitrary")),
        cost_estimate=attn_cost,
    )(adj_i8, z, er, elT, bias_pad)

    # Lane-dense (Np, F) slab -> module layout (N, H, D_out).  This slice +
    # reshape is the only post-processing (no (H,N,D)->(N,H,D) transpose).
    return out_pad[:N, :HD].reshape(N, H, D)


# ---------------------------------------------------------------------------
# Pure-JAX reference of the same forward pass.
# ---------------------------------------------------------------------------
def gat_reference(feat, fc_weight, attn_weights, bias, adj, *, num_heads,
                  out_feats, negative_slope=0.2):
    N = feat.shape[0]
    H, D = num_heads, out_feats
    z = (feat @ fc_weight.T).reshape(N, H, D)
    a = attn_weights.reshape(2, H, D)
    el = jnp.einsum("ihd,hd->ih", z, a[0])        # source scores
    er = jnp.einsum("jhd,hd->jh", z, a[1])        # destination scores
    logits = er[:, None, :] + el[None, :, :]      # (dst, src, H)
    logits = jnp.where(logits >= 0.0, logits, negative_slope * logits)
    mask = (adj > 0.0)[:, :, None]
    logits = jnp.where(mask, logits, -1e30)
    m = jnp.max(logits, axis=1, keepdims=True)
    p = jnp.where(mask, jnp.exp(logits - m), 0.0)
    alpha = p / jnp.sum(p, axis=1, keepdims=True)
    out = jnp.einsum("jih,ihd->jhd", alpha, z)
    return out + bias.reshape(1, H, D)


def _xavier_normal(key, shape, fan_in, fan_out, gain):
    std = gain * math.sqrt(2.0 / (fan_in + fan_out))
    return std * jax.random.normal(key, shape, dtype=jnp.float32)


if __name__ == "__main__":
    # Small, module-consistent shapes; N spans several 128-node tiles so the
    # online softmax across source tiles is actually exercised.
    N, in_feats, out_feats, num_heads = 300, 16, 8, 4
    negative_slope = 0.2

    key = jax.random.PRNGKey(0)
    k_feat, k_fc, k_attn, k_bias, k_adj = jax.random.split(key, 5)

    gain = math.sqrt(2.0)               # nn.init.calculate_gain('relu')
    HD = num_heads * out_feats
    fc_weight = _xavier_normal(k_fc, (HD, in_feats),
                               fan_in=in_feats, fan_out=HD, gain=gain)
    attn_weights = _xavier_normal(k_attn, (2 * HD,),
                                  fan_in=num_heads * out_feats,
                                  fan_out=2 * out_feats, gain=gain)
    # reset_parameters() zero-inits the bias; use a small nonzero one here so
    # the bias path is actually exercised by the numerical check.
    bias = 0.1 * jax.random.normal(k_bias, (HD,), dtype=jnp.float32)

    feat = jax.random.normal(k_feat, (N, in_feats), dtype=jnp.float32)

    # Random sparse directed graph + self loops; adj[dst, src] = 1 iff src->dst
    # (dense materialization of the CSC offsets/indices the module receives).
    adj = (jax.random.uniform(k_adj, (N, N)) < 0.05).astype(jnp.float32)
    adj = jnp.maximum(adj, jnp.eye(N, dtype=jnp.float32))   # add_self_loop

    out = cugraph_gat_conv(feat, fc_weight, attn_weights, bias, adj,
                           num_heads=num_heads, out_feats=out_feats,
                           negative_slope=negative_slope)
    out = jax.block_until_ready(out)

    ref = gat_reference(feat, fc_weight, attn_weights, bias, adj,
                        num_heads=num_heads, out_feats=out_feats,
                        negative_slope=negative_slope)
    assert out.shape == (N, num_heads, out_feats)
    np.testing.assert_allclose(np.asarray(out), np.asarray(ref),
                               rtol=1e-4, atol=1e-4)

    # TODO(synk): feat_drop>0 (dropout), the residual projection and the
    # activation are no-ops at the module defaults and are not emitted
    # in-kernel; bf16 MXU inputs (v6e/v7x micro-opt) are omitted to keep f32
    # parity with the PyTorch module.
    print("KERNEL_OK")
</pallas_src>

<mosaic_0001>
module attributes {stable_mosaic.version = 11 : i64} {
  func.func @_proj_kernel(%arg0: i32, %arg1: memref<128x16xf32, #tpu.memory_space<vmem>>, %arg2: memref<16x128xf32, #tpu.memory_space<vmem>>, %arg3: memref<128x4xf32, #tpu.memory_space<vmem>>, %arg4: memref<4x128xf32, #tpu.memory_space<vmem>>, %arg5: memref<128x128xf32, #tpu.memory_space<vmem>>, %arg6: memref<128x4xf32, #tpu.memory_space<vmem>>, %arg7: memref<4x128xf32, #tpu.memory_space<vmem>>) attributes {dimension_semantics = [#tpu.dimension_semantics<parallel>], iteration_bounds = array<i64: 3>, scalar_prefetch = 0 : i64, scratch_operands = 0 : i64, tpu.core_type = #tpu.core_type<tc>, window_params = [{transform_indices = @transform_0, window_bounds = array<i64: 128, 16>}, {pipeline_mode = #tpu.pipeline_mode<synchronous>, transform_indices = @transform_1, window_bounds = array<i64: 16, 128>}, {pipeline_mode = #tpu.pipeline_mode<synchronous>, transform_indices = @transform_2, window_bounds = array<i64: 128, 4>}, {pipeline_mode = #tpu.pipeline_mode<synchronous>, transform_indices = @transform_3, window_bounds = array<i64: 4, 128>}, {transform_indices = @transform_4, window_bounds = array<i64: 128, 128>}, {transform_indices = @transform_5, window_bounds = array<i64: 128, 4>}, {transform_indices = @transform_6, window_bounds = array<i64: 4, 128>}]} {
    %c0 = arith.constant 0 : index
    %c0_0 = arith.constant 0 : index
    %0 = vector.load %arg1[%c0, %c0_0] : memref<128x16xf32, #tpu.memory_space<vmem>>, vector<128x16xf32>
    %c0_1 = arith.constant 0 : index
    %c0_2 = arith.constant 0 : index
    %1 = vector.load %arg2[%c0_1, %c0_2] : memref<16x128xf32, #tpu.memory_space<vmem>>, vector<16x128xf32>
    %cst = arith.constant dense<0.000000e+00> : vector<128x128xf32>
    %2 = tpu.matmul %0, %1, %cst {dimension_numbers = #tpu.dot_dimension_numbers<[1], [0], [0], [1], [0, 0, 1, 1], [], []>} : vector<128x16xf32>, vector<16x128xf32>, vector<128x128xf32> -> vector<128x128xf32>
    %c0_3 = arith.constant 0 : index
    %c0_4 = arith.constant 0 : index
    %3 = vector.load %arg5[%c0_3, %c0_4] : memref<128x128xf32, #tpu.memory_space<vmem>>, vector<128x128xf32>
    tpu.vector_store %arg5[%c0_3, %c0_4], %2 {strides = array<i32>} : memref<128x128xf32, #tpu.memory_space<vmem>>, vector<128x128xf32>,
    %c0_5 = arith.constant 0 : index
    %c0_6 = arith.constant 0 : index
    %4 = vector.load %arg3[%c0_5, %c0_6] : memref<128x4xf32, #tpu.memory_space<vmem>>, vector<128x4xf32>
    %cst_7 = arith.constant dense<0.000000e+00> : vector<128x4xf32>
    %5 = tpu.matmul %2, %4, %cst_7 {dimension_numbers = #tpu.dot_dimension_numbers<[1], [0], [0], [1], [0, 0, 1, 1], [], []>} : vector<128x128xf32>, vector<128x4xf32>, vector<128x4xf32> -> vector<128x4xf32>
    %c0_8 = arith.constant 0 : index
    %c0_9 = arith.constant 0 : index
    %6 = vector.load %arg6[%c0_8, %c0_9] : memref<128x4xf32, #tpu.memory_space<vmem>>, vector<128x4xf32>
    tpu.vector_store %arg6[%c0_8, %c0_9], %5 {strides = array<i32>} : memref<128x4xf32, #tpu.memory_space<vmem>>, vector<128x4xf32>,
    %c0_10 = arith.constant 0 : index
    %c0_11 = arith.constant 0 : index
    %7 = vector.load %arg4[%c0_10, %c0_11] : memref<4x128xf32, #tpu.memory_space<vmem>>, vector<4x128xf32>
    %cst_12 = arith.constant dense<0.000000e+00> : vector<4x128xf32>
    %8 = tpu.matmul %7, %2, %cst_12 {dimension_numbers = #tpu.dot_dimension_numbers<[1], [1], [0], [0], [0, 0, 1, 0], [], []>} : vector<4x128xf32>, vector<128x128xf32>, vector<4x128xf32> -> vector<4x128xf32>
    %c0_13 = arith.constant 0 : index
    %c0_14 = arith.constant 0 : index
    %9 = vector.load %arg7[%c0_13, %c0_14] : memref<4x128xf32, #tpu.memory_space<vmem>>, vector<4x128xf32>
    tpu.vector_store %arg7[%c0_13, %c0_14], %8 {strides = array<i32>} : memref<4x128xf32, #tpu.memory_space<vmem>>, vector<4x128xf32>,
    return
  }
  func.func @transform_0(%arg0: i32) -> (i32, i32) {
    %c0_i32 = arith.constant 0 : i32
    %c0_i32_0 = arith.constant 0 : i32
    return %arg0, %c0_i32 : i32, i32
  }
  func.func @transform_1(%arg0: i32) -> (i32, i32) {
    %c0_i32 = arith.constant 0 : i32
    %c0_i32_0 = arith.constant 0 : i32
    %c0_i32_1 = arith.constant 0 : i32
    return %c0_i32, %c0_i32_0 : i32, i32
  }
  func.func @transform_2(%arg0: i32) -> (i32, i32) {
    %c0_i32 = arith.constant 0 : i32
    %c0_i32_0 = arith.constant 0 : i32
    %c0_i32_1 = arith.constant 0 : i32
    return %c0_i32, %c0_i32_0 : i32, i32
  }
  func.func @transform_3(%arg0: i32) -> (i32, i32) {
    %c0_i32 = arith.constant 0 : i32
    %c0_i32_0 = arith.constant 0 : i32
    %c0_i32_1 = arith.constant 0 : i32
    return %c0_i32, %c0_i32_0 : i32, i32
  }
  func.func @transform_4(%arg0: i32) -> (i32, i32) {
    %c0_i32 = arith.constant 0 : i32
    %c0_i32_0 = arith.constant 0 : i32
    return %arg0, %c0_i32 : i32, i32
  }
  func.func @transform_5(%arg0: i32) -> (i32, i32) {
    %c0_i32 = arith.constant 0 : i32
    %c0_i32_0 = arith.constant 0 : i32
    return %arg0, %c0_i32 : i32, i32
  }
  func.func @transform_6(%arg0: i32) -> (i32, i32) {
    %c0_i32 = arith.constant 0 : i32
    %c0_i32_0 = arith.constant 0 : i32
    return %c0_i32, %arg0 : i32, i32
  }
}

</mosaic_0001>

<bundles_post_ra>
// kernel: tpu_custom_call.1
= control target key start
LH: loop header
LB: loop body
LE: loop exit
PB: predicated region body
PF: predicated region fallthrough
CT: control target
= control target key end

     0   :  { %12 = vsyncpa [#allocation3], 0  ;;  %s1641_s0 = inlined_call_operand.vmem [shape: f32[384,16], index: 0, kind: input, shape index: {}]   ;;  %s1642_s1 = inlined_call_operand.vmem [shape: f32[16,128], index: 1, kind: input, shape index: {}]   ;;  %s1643_s2 = inlined_call_operand.vmem [shape: f32[128,4], index: 2, kind: input, shape index: {}]   ;;  %s1644_s3 = inlined_call_operand.vmem [shape: f32[4,128], index: 3, kind: input, shape index: {}]   ;;  %s1645_s4 = inlined_call_operand.hbm [shape: f32[384,128], index: 4, kind: output, shape index: {0}]   ;;  %s1646_s5 = inlined_call_operand.vmem [shape: f32[384,4], index: 5, kind: output, shape index: {1}]   ;;  %s1647_s6 = inlined_call_operand.hbm [shape: f32[4,384], index: 6, kind: output, shape index: {2}]  }
   0x1   :  { %14 = vsyncpa [#allocation3 + $0x1], 0 }
   0x2   :  { %15 = vsyncpa [#allocation5], 0 }
   0x3   :  { %17 = vsyncpa [#allocation5 + $0x1], 0  ;;  %s1316_s21 = smov 0   ;;  %s1318_s22 = smov 0  }
   0x4   :  { %s1320_s23 = smov 0   ;;  %s1322_s24 = smov 0  }
   0x5 LB: > { %s1337_s25 = sadd.s32 4294967295, %s1273_s24   ;;  %s915_s26 = sadd.s32 4294967294, %s1273_s24   ;;  %s1273_s24 = sphi %s1322_s24, %s1653_s24   ;;  %s1269_s23 = sphi %s1320_s23, %s1652_s23   ;;  %s1265_s22 = sphi %s1318_s22, %s1651_s22   ;;  %s1261_s21 = sphi %s1316_s21, %s1650_s21  }
   0x6   : > { %s1341_s27 = sadd.s32 1, %s1273_s24   ;;  %s119_s28 = sadd.s32 1, %s1269_s23 }
   0x7   : > { %s116_s29 = ssub.s32 %s1273_s24, %s1341_s27  ;;  %p129_p0 = scmp.ne.s32.totalorder %s1269_s23, %s1265_s22 }
   0x8   : > { %p117_p1 = scmp.eq.s32.totalorder %s116_s29, 0  ;;  %p130_p2 = scmp.eq.s32.totalorder %s1337_s25, 2 }
   0x9   : > { %p135_p3 = scmp.ne.s32.totalorder %s1265_s22, %s1261_s21  ;;  %p136_p4 = scmp.eq.s32.totalorder %s915_s26, 2 }
   0xa   : > { %s1352_s30 = scalar_select %p117_p1, %s1269_s23, %s119_s28  }
   0xb   : > { %p1354_p5 = por %p130_p2, %p129_p0  ;;  %p1358_p6 = por %p136_p4, %p135_p3 }
   0xc   : > { %p918_p7 = scmp.ge.s32.totalorder %s1273_s24, 1  ;;  %p224_p8 = scmp.lt.s32.totalorder %s1273_s24, 4 }
   0xe   : > { %p225_p9 = pnand %p918_p7, %p224_p8 }
   0xf   : > { %s921_s13 = sshll.u32 (!%p225_p9), %s1337_s25, 4  ;;  %s948_s17 = sshll.u32 (!%p225_p9), %s1337_s25, 11 }
  0x10   : > { %228 = sbr.rel (%p225_p9) target bundleno = 517 (0x205), region = 36  ;;  %p265_p10 = scmp.lt.s32.totalorder (!%p225_p9), %s921_s13, 47 }
  0x11   : > { %s1527_s26 = scalar_lea.hbm (!%p225_p9), %s1645_s4, %s948_s17  ;;  %s1277_s10 = smov (!%p225_p9), [#allocation2]  }
  0x15   : > { %v294_v0 = vld [vmem:[%s1642_s1 + $0x8] sm:$0xff]  ;;  %v293_v1 = vld [vmem:[%s1642_s1] sm:$0xff]  ;;  %v520_v2 = vld [vmem:[%s1643_s2 + $0x78] sm:$0xff]  ;;  %s1655_s13 = smov (!%p265_p10, %s921_s13), 47  ;;  %vm295_vm0 = vcmask 130048   ;;  %v1275_v34 = vmov 0.0  }
  0x16   : > { %1016 = vmatprep.subr.mxu1 %v294_v0  ;;  %s922_s16 = sshll.u32 %s1655_s13, 3  ;;  %v519_v6 = vld [vmem:[%s1643_s2 + $0x70] sm:$0xff]  ;;  %v518_v8 = vld [vmem:[%s1643_s2 + $0x68] sm:$0xff]  ;;  %v517_v10 = vld [vmem:[%s1643_s2 + $0x60] sm:$0xff]  ;;  %1100 = vmatprep.subr.mxu0 %v1275_v34  ;;  %vm1276_vm1 = vmmov 0  }
  0x17   : > { %1017 = vmatpush3.msra.mxu1 %v294_v0  ;;  %s1382_s19 = scalar_lea.vmem %s1641_s0, %s922_s16  ;;  %v516_v12 = vld [vmem:[%s1643_s2 + $0x58] sm:$0xff]  ;;  %v515_v14 = vld [vmem:[%s1643_s2 + $0x50] sm:$0xff]  ;;  %v514_v16 = vld [vmem:[%s1643_s2 + $0x48] sm:$0xff]  ;;  %1132 = vmatprep.mubr.msk.f32.mxu0 %vm1276_vm1, %v1275_v34 }
  0x18   : > { %1018 = vmatprep.subr.mxu1 %v293_v1  ;;  %v277_v3 = vld [vmem:[%s1382_s19] sm:$0xff]  ;;  %v278_v4 = vld [vmem:[%s1382_s19 + $0x8] sm:$0xff]  ;;  %v279_v5 = vld [vmem:[%s1382_s19 + $0x10] sm:$0xff] }
  0x19   : > { %1019 = vmatpush3.msra.mxu1 %v293_v1  ;;  %1020 = vmatprep.mubr.msk.f32.mxu1 %vm295_vm0, %v277_v3  ;;  %v280_v7 = vld [vmem:[%s1382_s19 + $0x18] sm:$0xff]  ;;  %v281_v9 = vld [vmem:[%s1382_s19 + $0x20] sm:$0xff]  ;;  %v282_v11 = vld [vmem:[%s1382_s19 + $0x28] sm:$0xff] }
  0x1a   : > { %1044 = vmatprep.subr.mxu1 %v520_v2  ;;  %1021 = vmatmul.mubr.msk.f32.vlgmr.msra.gmra.mxu1 %vm295_vm0, %v278_v4  ;;  %v283_v13 = vld [vmem:[%s1382_s19 + $0x30] sm:$0xff]  ;;  %v284_v15 = vld [vmem:[%s1382_s19 + $0x38] sm:$0xff]  ;;  %v285_v17 = vld [vmem:[%s1382_s19 + $0x40] sm:$0xff] }
  0x1b   : > { %1023 = vmatprep.mubr.msk.f32.mxu1 %vm295_vm0, %v279_v5  ;;  %1045 = vmatpush3.msra.mxu1 %v520_v2  ;;  %v513_v18 = vld [vmem:[%s1643_s2 + $0x40] sm:$0xff]  ;;  %v286_v19 = vld [vmem:[%s1382_s19 + $0x48] sm:$0xff]  ;;  %v512_v20 = vld [vmem:[%s1643_s2 + $0x38] sm:$0xff] }
  0x1c   : > { %1046 = vmatprep.subr.mxu1 %v519_v6  ;;  %v287_v21 = vld [vmem:[%s1382_s19 + $0x50] sm:$0xff]  ;;  %v288_v23 = vld [vmem:[%s1382_s19 + $0x58] sm:$0xff]  ;;  %v510_v24 = vld [vmem:[%s1643_s2 + $0x28] sm:$0xff] }
  0x1d   : > { %1047 = vmatpush3.msra.mxu1 %v519_v6  ;;  %v511_v22 = vld [vmem:[%s1643_s2 + $0x30] sm:$0xff]  ;;  %v289_v25 = vld [vmem:[%s1382_s19 + $0x60] sm:$0xff]  ;;  %v290_v27 = vld [vmem:[%s1382_s19 + $0x68] sm:$0xff] }
  0x1e   : > { %1024 = vmatmul.mubr.msk.f32.gmra.mxu1 %vm295_vm0, %v280_v7  ;;  %1048 = vmatprep.subr.mxu1 %v518_v8  ;;  %v509_v26 = vld [vmem:[%s1643_s2 + $0x20] sm:$0xff]  ;;  %v508_v28 = vld [vmem:[%s1643_s2 + $0x18] sm:$0xff]  ;;  %v291_v29 = vld [vmem:[%s1382_s19 + $0x70] sm:$0xff] }
  0x1f   : > { %1026 = vmatprep.mubr.msk.f32.mxu1 %vm295_vm0, %v281_v9  ;;  %1049 = vmatpush3.msra.mxu1 %v518_v8  ;;  %v507_v30 = vld [vmem:[%s1643_s2 + $0x10] sm:$0xff]  ;;  %v292_v31 = vld [vmem:[%s1382_s19 + $0x78] sm:$0xff]  ;;  %v506_v32 = vld [vmem:[%s1643_s2 + $0x8] sm:$0xff]  ;;  %s1464_s19 = sand.u32 1, %s1265_s22  }
  0x20   : > { %1050 = vmatprep.subr.mxu1 %v517_v10  ;;  %v505_v33 = vld [vmem:[%s1643_s2] sm:$0xff]  ;;  %s919_s11 = sshll.u32 %s1464_s19, 7  ;;  %s756_s29 = scalar_lea.sflag [#allocation3], %s1464_s19 }
  0x21   : > { %1051 = vmatpush3.msra.mxu1 %v517_v10  ;;  %s1469_s12 = scalar_lea.vmem [#allocation2], %s919_s11  ;;  %v683_v51 = vld [vmem:[%s1644_s3] sm:$0xf]  ;;  %s1187_s11 = sshll.u32 %s1277_s10, 4  ;;  %s1188_s11 = int_to_ptr.vmem [resolvable:$false] %s1187_s11 }
  0x22   : > { %1027 = vmatmul.mubr.msk.f32.gmra.mxu1 %vm295_vm0, %v282_v11  ;;  %1052 = vmatprep.subr.mxu1 %v516_v12  ;;  %s779_s28 = sshll.u32 %s1469_s12, 4  ;;  %s1189_s14 = scalar_lea.vmem %s1188_s11, 4096  ;;  %s1530_s28 = int_to_ptr.vmem [resolvable:$true] %s779_s28 }
  0x23   : > { %1029 = vmatprep.mubr.msk.f32.mxu1 %vm295_vm0, %v283_v13  ;;  %1053 = vmatpush3.msra.mxu1 %v516_v12  ;;  %s1183_s9 = scalar_lea.vmem %s1530_s28, 2048  ;;  %p1190_p0 = scmp.lt.s32.totalorder %s1530_s28, %s1188_s11 }
  0x24   : > { %1054 = vmatprep.subr.mxu1 %v515_v14  ;;  %p1184_p11 = scmp.ne.s32.totalorder %s1530_s28, %s1183_s9  ;;  %p1191_p1 = scmp.lt.s32.totalorder %s1189_s14, %s1183_s9 }
  0x25   : > { %1055 = vmatpush3.msra.mxu1 %v515_v14 }
  0x26   : > { %1030 = vmatmul.mubr.msk.f32.gmra.mxu1 %vm295_vm0, %v284_v15  ;;  %1056 = vmatprep.subr.mxu1 %v514_v16  ;;  %p1185_p12 = pnand %p1184_p11, %p1354_p5  ;;  %p1192_p2 = por %p1191_p1, %p1190_p0 }
  0x27   : > { %1032 = vmatprep.mubr.msk.f32.mxu1 %vm295_vm0, %v285_v17  ;;  %1057 = vmatpush3.msra.mxu1 %v514_v16 }
  0x28   : > { %1058 = vmatprep.subr.mxu1 %v513_v18  ;;  %p1186_p13 = pneg %p1185_p12 }
  0x29   : > { %1059 = vmatpush3.msra.mxu1 %v513_v18 }
  0x2a   : > { %1033 = vmatmul.mubr.msk.f32.gmra.mxu1 %vm295_vm0, %v286_v19  ;;  %1060 = vmatprep.subr.mxu1 %v512_v20  ;;  %p1193_p3 = pnand %p1192_p2, %p1186_p13 }
  0x2b   : > { %1035 = vmatprep.mubr.msk.f32.mxu1 %vm295_vm0, %v287_v21  ;;  %1061 = vmatpush3.msra.mxu1 %v512_v20 }
  0x2c   : > { %1062 = vmatprep.subr.mxu1 %v511_v22 }
  0x2d   : > { %1063 = vmatpush3.msra.mxu1 %v511_v22 }
  0x2e   : > { %1036 = vmatmul.mubr.msk.f32.gmra.mxu1 %vm295_vm0, %v288_v23  ;;  %1064 = vmatprep.subr.mxu1 %v510_v24 }
  0x2f   : > { %1038 = vmatprep.mubr.msk.f32.mxu1 %vm295_vm0, %v289_v25  ;;  %1065 = vmatpush3.msra.mxu1 %v510_v24 }
  0x30   : > { %1066 = vmatprep.subr.mxu1 %v509_v26 }
  0x31   : > { %1067 = vmatpush3.msra.mxu1 %v509_v26 }
  0x32   : > { %1039 = vmatmul.mubr.msk.f32.gmra.mxu1 %vm295_vm0, %v290_v27  ;;  %1068 = vmatprep.subr.mxu1 %v508_v28 }
  0x33   : > { %1041 = vmatprep.mubr.msk.f32.mxu1 %vm295_vm0, %v291_v29  ;;  %1069 = vmatpush3.msra.mxu1 %v508_v28 }
  0x34   : > { %1070 = vmatprep.subr.mxu1 %v507_v30 }
  0x35   : > { %1071 = vmatpush3.msra.mxu1 %v507_v30 }
  0x36   : > { %1042 = vmatmul.mubr.msk.f32.gmra.mxu1 %vm295_vm0, %v292_v31  ;;  %1072 = vmatprep.subr.mxu1 %v506_v32 }
  0x37   : > { %1073 = vmatpush3.msra.mxu1 %v506_v32 }
  0x38   : > { %1074 = vmatprep.subr.mxu1 %v505_v33 }
  0x39   : > { %1075 = vmatpush3.msra.mxu1 %v505_v33 }
  0xda   : > { %v1467_v35 = vpop.f32.mrf.mxu1 }
  0xdb   : > { %490 = vst [vmem:[%s1469_s12 + $0x8] sm:$0xff] %v1467_v35 }
  0xdc   : > { %v1473_v36 = vpop.f32.mrf.mxu1 }
  0xdd   : > { %489 = vst [vmem:[%s1469_s12] sm:$0xff] %v1473_v36  ;;  %1076 = vmatprep.mubr.f32.mxu1 %v1473_v36 }
  0xde   : > { %v1478_v37 = vpop.f32.mrf.mxu1  ;;  %1077 = vmatmul.mubr.f32.vlgmr.msra.gmra.mxu1 %v1467_v35 }
  0xdf   : > { %492 = vst [vmem:[%s1469_s12 + $0x18] sm:$0xff] %v1478_v37 }
  0xe0   : > { %v1483_v38 = vpop.f32.mrf.mxu1 }
  0xe1   : > { %491 = vst [vmem:[%s1469_s12 + $0x10] sm:$0xff] %v1483_v38  ;;  %1079 = vmatprep.mubr.f32.mxu1 %v1483_v38 }
  0xe2   : > { %v1028_v39 = vpop.f32.mrf.mxu1  ;;  %1080 = vmatmul.mubr.f32.gmra.mxu1 %v1478_v37 }
  0xe3   : > { %494 = vst [vmem:[%s1469_s12 + $0x28] sm:$0xff] %v1028_v39 }
  0xe4   : > { %v430_v40 = vpop.f32.mrf.mxu1 }
  0xe5   : > { %493 = vst [vmem:[%s1469_s12 + $0x20] sm:$0xff] %v430_v40  ;;  %1082 = vmatprep.mubr.f32.mxu1 %v430_v40 }
  0xe6   : > { %v1031_v41 = vpop.f32.mrf.mxu1  ;;  %1083 = vmatmul.mubr.f32.gmra.mxu1 %v1028_v39 }
  0xe7   : > { %496 = vst [vmem:[%s1469_s12 + $0x38] sm:$0xff] %v1031_v41 }
  0xe8   : > { %v440_v42 = vpop.f32.mrf.mxu1 }
  0xe9   : > { %495 = vst [vmem:[%s1469_s12 + $0x30] sm:$0xff] %v440_v42  ;;  %1085 = vmatprep.mubr.f32.mxu1 %v440_v42 }
  0xea   : > { %v1034_v43 = vpop.f32.mrf.mxu1  ;;  %1086 = vmatmul.mubr.f32.gmra.mxu1 %v1031_v41 }
  0xeb   : > { %498 = vst [vmem:[%s1469_s12 + $0x48] sm:$0xff] %v1034_v43 }
  0xec   : > { %v450_v44 = vpop.f32.mrf.mxu1 }
  0xed   : > { %497 = vst [vmem:[%s1469_s12 + $0x40] sm:$0xff] %v450_v44  ;;  %1088 = vmatprep.mubr.f32.mxu1 %v450_v44 }
  0xee   : > { %v1037_v45 = vpop.f32.mrf.mxu1  ;;  %1089 = vmatmul.mubr.f32.gmra.mxu1 %v1034_v43 }
  0xef   : > { %500 = vst [vmem:[%s1469_s12 + $0x58] sm:$0xff] %v1037_v45 }
  0xf0   : > { %v460_v46 = vpop.f32.mrf.mxu1 }
  0xf1   : > { %499 = vst [vmem:[%s1469_s12 + $0x50] sm:$0xff] %v460_v46  ;;  %1091 = vmatprep.mubr.f32.mxu1 %v460_v46 }
  0xf2   : > { %v1040_v47 = vpop.f32.mrf.mxu1  ;;  %1092 = vmatmul.mubr.f32.gmra.mxu1 %v1037_v45 }
  0xf3   : > { %502 = vst [vmem:[%s1469_s12 + $0x68] sm:$0xff] %v1040_v47 }
  0xf4   : > { %v470_v48 = vpop.f32.mrf.mxu1 }
  0xf5   : > { %501 = vst [vmem:[%s1469_s12 + $0x60] sm:$0xff] %v470_v48  ;;  %1094 = vmatprep.mubr.f32.mxu1 %v470_v48 }
  0xf6   : > { %v1043_v49 = vpop.f32.mrf.mxu1  ;;  %1095 = vmatmul.mubr.f32.gmra.mxu1 %v1040_v47 }
  0xf7   : > { %504 = vst [vmem:[%s1469_s12 + $0x78] sm:$0xff] %v1043_v49  ;;  %1101 = vmatpush3.xpose.msra.mxu0 %v1043_v49 }
  0xf8   : > { %v480_v50 = vpop.f32.mrf.mxu1  ;;  %1102 = vmatprep.subr.mxu0 %v1275_v34 }
  0xf9   : > { %503 = vst [vmem:[%s1469_s12 + $0x70] sm:$0xff] %v480_v50  ;;  %1097 = vmatprep.mubr.f32.mxu1 %v480_v50 }
  0xfa   : > { %1098 = vmatmul.mubr.f32.gmra.mxu1 %v1043_v49 }
  0xfb   : > { %1103 = vmatpush3.xpose.msra.mxu0 %v480_v50 }
  0xfc   : > { %1104 = vmatprep.subr.mxu0 %v1275_v34 }
  0xff   : > { %1105 = vmatpush3.xpose.msra.mxu0 %v1040_v47 }
 0x100   : > { %1106 = vmatprep.subr.mxu0 %v1275_v34 }
 0x103   : > { %1107 = vmatpush3.xpose.msra.mxu0 %v470_v48 }
 0x104   : > { %1108 = vmatprep.subr.mxu0 %v1275_v34 }
 0x107   : > { %1109 = vmatpush3.xpose.msra.mxu0 %v1037_v45 }
 0x108   : > { %1110 = vmatprep.subr.mxu0 %v1275_v34 }
 0x10b   : > { %1111 = vmatpush3.xpose.msra.mxu0 %v460_v46 }
 0x10c   : > { %1112 = vmatprep.subr.mxu0 %v1275_v34 }
 0x10f   : > { %1113 = vmatpush3.xpose.msra.mxu0 %v1034_v43 }
 0x110   : > { %1114 = vmatprep.subr.mxu0 %v1275_v34 }
 0x113   : > { %1115 = vmatpush3.xpose.msra.mxu0 %v450_v44 }
 0x114   : > { %1116 = vmatprep.subr.mxu0 %v1275_v34 }
 0x117   : > { %1117 = vmatpush3.xpose.msra.mxu0 %v1031_v41 }
 0x118   : > { %1118 = vmatprep.subr.mxu0 %v1275_v34 }
 0x11b   : > { %1119 = vmatpush3.xpose.msra.mxu0 %v440_v42 }
 0x11c   : > { %1120 = vmatprep.subr.mxu0 %v1275_v34 }
 0x11f   : > { %1121 = vmatpush3.xpose.msra.mxu0 %v1028_v39 }
 0x120   : > { %1122 = vmatprep.subr.mxu0 %v1275_v34 }
 0x123   : > { %1123 = vmatpush3.xpose.msra.mxu0 %v430_v40 }
 0x124   : > { %1124 = vmatprep.subr.mxu0 %v1275_v34 }
 0x127   : > { %1125 = vmatpush3.xpose.msra.mxu0 %v1478_v37 }
 0x128   : > { %1126 = vmatprep.subr.mxu0 %v1275_v34 }
 0x12b   : > { %1127 = vmatpush3.xpose.msra.mxu0 %v1483_v38 }
 0x12c   : > { %1128 = vmatprep.subr.mxu0 %v1275_v34 }
 0x12f   : > { %1129 = vmatpush3.xpose.msra.mxu0 %v1467_v35 }
 0x130   : > { %1130 = vmatprep.subr.mxu0 %v1275_v34 }
 0x133   : > { %1131 = vmatpush3.xpose.msra.mxu0 %v1473_v36 }
 0x136   : > { %1133 = vmatmul.mubr.f32.vlgmr.msra.gmra.mxu0 %v683_v51 }
 0x137   : > { %1196 = shalt.err (!%p1193_p3)
}
 0x138   : > { %s1197_s12 = scalar_lea.hbm %s1527_s26, 2048  ;;  %s1201_s18 = scalar_lea.hbm %s1645_s4, 6144 }
 0x139   : > { %p1198_p4 = scmp.ne.s32.totalorder %s1527_s26, %s1197_s12  ;;  %p1202_p9 = scmp.lt.s32.totalorder %s1527_s26, %s1645_s4 }
 0x13a   : > { %p1203_p10 = scmp.lt.s32.totalorder %s1201_s18, %s1197_s12 }
 0x13b   : > { %p1199_p7 = pnand %p1198_p4, %p1354_p5 }
 0x13c   : > { %p1204_p11 = por %p1203_p10, %p1202_p9 }
 0x13d   : > { %p1200_p8 = pneg %p1199_p7 }
 0x13f   : > { %p1205_p12 = pnand %p1204_p11, %p1200_p8 }
 0x141   : > { %1208 = shalt.err (!%p1205_p12)
}
 0x142   : > { %s1278_s9 = smov 128   ;;  %s1279_s11 = smov 8   ;;  %vm666_vm2 = vcmask 31744  }
 0x143   : > { %1135 = dma.vmem_to_hbm [thread:$0]  (%p1354_p5), %s1530_s28, 2048, %s1527_s26, %s756_s29, %s1278_s9, %s1278_s9, %s1279_s11  }
 0x144   : > { %s1560_s17 = scalar_lea.vmem %s1646_s5, %s922_s16  ;;  %s920_s13 = sshll.u32 %s1464_s19, 2 }
 0x145   : > { %s263_s16 = scalar_lea.vmem [#allocation4], %s920_s13  ;;  %s945_s28 = sshll.u32 %s1337_s25, 6 }
 0x146   : > { %s799_s26 = sshll.u32 %s263_s16, 4  ;;  %s1601_s18 = scalar_lea.hbm %s1647_s6, %s945_s28  ;;  %s1596_s26 = int_to_ptr.vmem [resolvable:$true] %s799_s26 }
 0x147   : > { %s766_s20 = scalar_lea.sflag [#allocation5], %s1464_s19  ;;  %s1209_s10 = scalar_lea.vmem %s1596_s26, 64 }
 0x148   : > { %p1210_p13 = scmp.ne.s32.totalorder %s1596_s26, %s1209_s10  ;;  %s1280_s25 = smov [#allocation4]  }
 0x149   : > { %s1213_s9 = sshll.u32 %s1280_s25, 4  ;;  %s1214_s9 = int_to_ptr.vmem [resolvable:$false] %s1213_s9 }
 0x14a   : > { %p1211_p0 = pnand %p1210_p13, %p1354_p5  ;;  %s1215_s11 = scalar_lea.vmem %s1214_s9, 128 }
 0x14b   : > { %p1216_p2 = scmp.lt.s32.totalorder %s1596_s26, %s1214_s9  ;;  %p1217_p3 = scmp.lt.s32.totalorder %s1215_s11, %s1209_s10 }
 0x14c   : > { %p1212_p1 = pneg %p1211_p0 }
 0x14d   : > { %p1218_p4 = por %p1217_p3, %p1216_p2 }
 0x14f   : > { %p1219_p7 = pnand %p1218_p4, %p1212_p1 }
 0x19e   : > { %v1078_v52 = vpop.f32.mrf.mxu1 }
 0x19f   : > { %668 = vst.msk [vmem:[%s1560_s17 + $0x8] sm:$0xff] %vm666_vm2, %v1078_v52 }
 0x1a0   : > { %v587_v53 = vpop.f32.mrf.mxu1 }
 0x1a1   : > { %667 = vst.msk [vmem:[%s1560_s17] sm:$0xff] %vm666_vm2, %v587_v53 }
 0x1a2   : > { %v1081_v54 = vpop.f32.mrf.mxu1 }
 0x1a3   : > { %670 = vst.msk [vmem:[%s1560_s17 + $0x18] sm:$0xff] %vm666_vm2, %v1081_v54 }
 0x1a4   : > { %v597_v55 = vpop.f32.mrf.mxu1 }
 0x1a5   : > { %669 = vst.msk [vmem:[%s1560_s17 + $0x10] sm:$0xff] %vm666_vm2, %v597_v55 }
 0x1a6   : > { %v1084_v56 = vpop.f32.mrf.mxu1 }
 0x1a7   : > { %672 = vst.msk [vmem:[%s1560_s17 + $0x28] sm:$0xff] %vm666_vm2, %v1084_v56 }
 0x1a8   : > { %v607_v57 = vpop.f32.mrf.mxu1 }
 0x1a9   : > { %671 = vst.msk [vmem:[%s1560_s17 + $0x20] sm:$0xff] %vm666_vm2, %v607_v57 }
 0x1aa   : > { %v1087_v58 = vpop.f32.mrf.mxu1 }
 0x1ab   : > { %674 = vst.msk [vmem:[%s1560_s17 + $0x38] sm:$0xff] %vm666_vm2, %v1087_v58 }
 0x1ac   : > { %v617_v59 = vpop.f32.mrf.mxu1 }
 0x1ad   : > { %673 = vst.msk [vmem:[%s1560_s17 + $0x30] sm:$0xff] %vm666_vm2, %v617_v59 }
 0x1ae   : > { %v1090_v60 = vpop.f32.mrf.mxu1 }
 0x1af   : > { %676 = vst.msk [vmem:[%s1560_s17 + $0x48] sm:$0xff] %vm666_vm2, %v1090_v60 }
 0x1b0   : > { %v627_v61 = vpop.f32.mrf.mxu1 }
 0x1b1   : > { %675 = vst.msk [vmem:[%s1560_s17 + $0x40] sm:$0xff] %vm666_vm2, %v627_v61 }
 0x1b2   : > { %v1093_v62 = vpop.f32.mrf.mxu1 }
 0x1b3   : > { %678 = vst.msk [vmem:[%s1560_s17 + $0x58] sm:$0xff] %vm666_vm2, %v1093_v62 }
 0x1b4   : > { %v637_v63 = vpop.f32.mrf.mxu1 }
 0x1b5   : > { %677 = vst.msk [vmem:[%s1560_s17 + $0x50] sm:$0xff] %vm666_vm2, %v637_v63 }
 0x1b6   : > { %v1096_v0 = vpop.f32.mrf.mxu1 }
 0x1b7   : > { %680 = vst.msk [vmem:[%s1560_s17 + $0x68] sm:$0xff] %vm666_vm2, %v1096_v0 }
 0x1b8   : > { %v647_v1 = vpop.f32.mrf.mxu1 }
 0x1b9   : > { %679 = vst.msk [vmem:[%s1560_s17 + $0x60] sm:$0xff] %vm666_vm2, %v647_v1 }
 0x1ba   : > { %v1099_v2 = vpop.f32.mrf.mxu1 }
 0x1bb   : > { %682 = vst.msk [vmem:[%s1560_s17 + $0x78] sm:$0xff] %vm666_vm2, %v1099_v2 }
 0x1bc   : > { %v657_v3 = vpop.f32.mrf.mxu1 }
 0x1bd   : > { %681 = vst.msk [vmem:[%s1560_s17 + $0x70] sm:$0xff] %vm666_vm2, %v657_v3 }
 0x1f6   : > { %v750_v4 = vpop.f32.mrf.mxu0 }
 0x1f7   : > { %754 = vst [vmem:[%s263_s16] sm:$0xf] %v750_v4 }
 0x1f8   : > { %v1134_v5 = vpop.f32.mrf.mxu0 }
 0x1f9   : > { %1222 = shalt.err (!%p1219_p7)
}
 0x1fa   : > { %s1223_s14 = scalar_lea.hbm %s1601_s18, 64  ;;  %s1227_s17 = scalar_lea.hbm %s1647_s6, 192 }
 0x1fb   : > { %p1224_p8 = scmp.ne.s32.totalorder %s1601_s18, %s1223_s14  ;;  %p1228_p11 = scmp.lt.s32.totalorder %s1601_s18, %s1647_s6 }
 0x1fc   : > { %p1229_p12 = scmp.lt.s32.totalorder %s1227_s17, %s1223_s14 }
 0x1fd   : > { %p1225_p9 = pnand %p1224_p8, %p1354_p5 }
 0x1fe   : > { %p1230_p13 = por %p1229_p12, %p1228_p11 }
 0x1ff   : > { %p1226_p10 = pneg %p1225_p9 }
 0x201   : > { %p1231_p0 = pnand %p1230_p13, %p1226_p10 }
 0x203   : > { %1234 = shalt.err (!%p1231_p0)
}
 0x204   : > { %1136 = dma.vmem_to_hbm [thread:$0]  (%p1354_p5), %s1596_s26, 64, %s1601_s18, %s766_s20  }
 0x205 PF: > { %p1146_p1 = scmp.ge.s32.totalorder %s1273_s24, 2  ;;  %s811_s28 = sand.u32 1, %s1261_s21  }
 0x206   : > { %s812_s29 = scalar_lea.sflag [#allocation3], %s811_s28 }
 0x207   : > { %p1140_p2 = pnand %p1146_p1, %p1358_p6 }
 0x209   : > { %p1141_p3 = pneg %p1140_p2 }
 0x20b   : > { %1252 = dma.done.wait (%p1141_p3), %s812_s29, 2048  }
 0x20c   : > { %1254 = vsyncadd (%p1141_p3), %s812_s29, 4294965248  ;;  %s829_s12 = scalar_lea.sflag [#allocation5], %s811_s28 }
 0x20d   : > { %1256 = dma.done.wait (%p1141_p3), %s829_s12, 64  }
 0x20e   : > { %1258 = vsyncadd (%p1141_p3), %s829_s12, 4294967232  ;;  %p20_p5 = scmp.ge.s32.totalorder %s1341_s27, 5   ;;  %s1650_s21 = smov %s1265_s22 }
 0x20f   : > { %s1651_s22 = smov %s1269_s23  ;;  %s1652_s23 = smov %s1352_s30 }
 0x210   : > { %s1653_s24 = smov %s1341_s27  ;;  %22 = sbr.rel (!%p20_p5) target bundleno = 5 (0x5), region = 100 }
 0x215   :  { %834 = vsyncpa [#allocation3], 1 }
 0x216   :  { %836 = vsyncpa [#allocation3 + $0x1], 1 }
 0x217   :  { %837 = vsyncpa [#allocation5], 1 }
 0x218   :  { %839 = vsyncpa [#allocation5 + $0x1], 1 }

</bundles_post_ra>
